<compile_context>
chip_gen: v7x
topology: tpu7x:2x2x1
jax: 0.10.0
libtpu: 0.0.40
codegen_flags: <defaults>
</compile_context>

<pallas_src>
import functools

import jax
import jax.numpy as jnp
from jax.experimental import pallas as pl
from jax.experimental.pallas import tpu as pltpu

HIDDEN = 128  # hidden width == padded contraction width


# ---------------------------------------------------------------------------
# Kernel: fused 3-layer MLP forward on one batch tile.
#   x_ref   : (tb, n_obs)      f32   observations at natural width
#   w_ref   : (3, 128, 128)    bf16  packed [w1_pad | w2 | w3_pad]
#   b_ref   : (3, 1, 128)      f32   packed [b1 | b2 | b3_pad]
#   o_ref   : (tb, n_act)      f32   Q-values (only useful lanes written)
#   xpad_ref: (max(8,tb), 128) f32   VMEM scratch for the padded input tile
# ---------------------------------------------------------------------------
def dqn_kernel(x_ref, w_ref, b_ref, o_ref, xpad_ref):
    tb, n_obs = x_ref.shape
    n_act = o_ref.shape[-1]
    bf16 = jnp.bfloat16

    # In-kernel zero-padding of the input tile (replaces the wrapper pad op).
    xpad_ref[...] = jnp.zeros_like(xpad_ref)
    xpad_ref[0:tb, 0:n_obs] = x_ref[...]
    x = xpad_ref[...].astype(bf16)                                 # (TB, 128)

    # layer1 + ReLU (bf16 operands on the MXU, f32 accumulate / elementwise)
    h1 = jnp.dot(x, w_ref[0], preferred_element_type=jnp.float32)
    h1 = jnp.maximum(h1 + b_ref[0], 0.0)

    # layer2 + ReLU
    h2 = jnp.dot(h1.astype(bf16), w_ref[1], preferred_element_type=jnp.float32)
    h2 = jnp.maximum(h2 + b_ref[1], 0.0)

    # layer3 (no activation).  Only real rows / useful lanes are stored, so
    # padded rows/lanes never leave the kernel (no reliance on zero padding
    # downstream, no wrapper slice op).
    out = jnp.dot(h2.astype(bf16), w_ref[2], preferred_element_type=jnp.float32)
    out = out + b_ref[2]
    o_ref[...] = out[0:tb, 0:n_act].astype(o_ref.dtype)


# ---------------------------------------------------------------------------
# Parameter packing: 6 tensors -> 2 slabs (built once, outside the hot loop).
# ---------------------------------------------------------------------------
def pack_params(params):
    w1, b1, w2, b2, w3, b3 = params
    n_obs = w1.shape[0]
    n_act = w3.shape[1]

    w_slab = jnp.zeros((3, HIDDEN, HIDDEN), jnp.bfloat16)
    w_slab = w_slab.at[0, :n_obs, :].set(w1.astype(jnp.bfloat16))
    w_slab = w_slab.at[1, :, :].set(w2.astype(jnp.bfloat16))
    w_slab = w_slab.at[2, :, :n_act].set(w3.astype(jnp.bfloat16))

    b_slab = jnp.zeros((3, 1, HIDDEN), jnp.float32)
    b_slab = b_slab.at[0, 0, :].set(b1.reshape(-1))
    b_slab = b_slab.at[1, 0, :].set(b2.reshape(-1))
    b_slab = b_slab.at[2, 0, :n_act].set(b3.reshape(-1))
    return w_slab, b_slab


# ---------------------------------------------------------------------------
# Batch-tile policy.
# ---------------------------------------------------------------------------
def _pick_batch_tile(B):
    if B <= 128:
        return B                    # hot inference path: one tile, no padding
    if B % 16 == 0 and B <= 4096:
        return B // 2               # 2 big tiles -> both v7x TCs participate
    for cand in (2048, 1024, 512, 256, 128, 64, 32, 16, 8):
        if B % cand == 0:
            return cand             # big tiles: per-step overhead >> compute
    return 8                        # fallback; wrapper pads (cold path only)


# ---------------------------------------------------------------------------
# Forward wrapper: exactly one pallas_call per step on the hot path.
# ---------------------------------------------------------------------------
@functools.partial(jax.jit, static_argnums=(3,))
def dqn_forward(x, w_slab, b_slab, n_actions):
    B, n_obs = x.shape
    tb = _pick_batch_tile(B)
    grid_b = pl.cdiv(B, tb)
    b_pad = grid_b * tb
    if b_pad != B:                  # only when B has no nice divisor
        x = jnp.pad(x, ((0, b_pad - B), (0, 0)))

    tb_pad = max(8, tb)             # >=8 sublanes for the padded VMEM tile

    flops = 2 * b_pad * HIDDEN * (n_obs + HIDDEN + n_actions)
    bytes_accessed = (w_slab.size * 2 + b_slab.size * 4
                      + b_pad * n_obs * 4 + b_pad * n_actions * 4)

    out = pl.pallas_call(
        dqn_kernel,
        out_shape=jax.ShapeDtypeStruct((b_pad, n_actions), jnp.float32),
        grid_spec=pltpu.PrefetchScalarGridSpec(
            num_scalar_prefetch=0,
            grid=(grid_b,),
            in_specs=[
                pl.BlockSpec((tb, n_obs), lambda i: (i, 0)),
                pl.BlockSpec((3, HIDDEN, HIDDEN), lambda i: (0, 0, 0)),
                pl.BlockSpec((3, 1, HIDDEN), lambda i: (0, 0, 0)),
            ],
            out_specs=pl.BlockSpec((tb, n_actions), lambda i: (i, 0)),
            scratch_shapes=[pltpu.VMEM((tb_pad, HIDDEN), jnp.float32)],
        ),
        compiler_params=pltpu.CompilerParams(
            dimension_semantics=("parallel",),
        ),
        cost_estimate=pl.CostEstimate(
            flops=flops, transcendentals=0, bytes_accessed=bytes_accessed),
    )(x, w_slab, b_slab)

    if b_pad != B:
        out = out[:B]
    return out


# ---------------------------------------------------------------------------
# Init (mimics torch.nn.Linear default: U(-1/sqrt(fan_in), 1/sqrt(fan_in)))
# and pure-JAX references.
# ---------------------------------------------------------------------------
def init_dqn_params(key, n_observations, n_actions, hidden=HIDDEN):
    def linear(k, fan_in, fan_out):
        kw, kb = jax.random.split(k)
        bound = 1.0 / jnp.sqrt(fan_in)
        w = jax.random.uniform(kw, (fan_in, fan_out), jnp.float32, -bound, bound)
        b = jax.random.uniform(kb, (1, fan_out), jnp.float32, -bound, bound)
        return w, b

    k1, k2, k3 = jax.random.split(key, 3)
    w1, b1 = linear(k1, n_observations, hidden)
    w2, b2 = linear(k2, hidden, hidden)
    w3, b3 = linear(k3, hidden, n_actions)
    return (w1, b1, w2, b2, w3, b3)


def dqn_reference_f32(x, params):
    w1, b1, w2, b2, w3, b3 = params
    h1 = jnp.maximum(x @ w1 + b1, 0.0)
    h2 = jnp.maximum(h1 @ w2 + b2, 0.0)
    return h2 @ w3 + b3


def dqn_reference_bf16(x, params):
    # Emulates the kernel numerics (bf16 operands, f32 accumulate/elementwise).
    w1, b1, w2, b2, w3, b3 = params
    bf = jnp.bfloat16
    h1 = jnp.dot(x.astype(bf), w1.astype(bf), preferred_element_type=jnp.float32)
    h1 = jnp.maximum(h1 + b1, 0.0)
    h2 = jnp.dot(h1.astype(bf), w2.astype(bf), preferred_element_type=jnp.float32)
    h2 = jnp.maximum(h2 + b2, 0.0)
    out = jnp.dot(h2.astype(bf), w3.astype(bf), preferred_element_type=jnp.float32)
    return out + b3


if __name__ == "__main__":
    # CartPole-style problem: 4 observations, 2 actions, small batch.
    B, N_OBS, N_ACT = 2, 4, 2

    key = jax.random.PRNGKey(0)
    k_params, k_x, k_xb = jax.random.split(key, 3)

    params = init_dqn_params(k_params, N_OBS, N_ACT)
    w_slab, b_slab = pack_params(params)       # built once, reused every call
    x = jax.random.normal(k_x, (B, N_OBS), dtype=jnp.float32)

    # Hot per-step path (B=2): one pallas_call, no wrapper pad/slice ops.
    out = jax.block_until_ready(dqn_forward(x, w_slab, b_slab, N_ACT))
    assert out.shape == (B, N_ACT)

    ref_bf16 = dqn_reference_bf16(x, params)
    assert jnp.allclose(out, ref_bf16, atol=2e-3, rtol=2e-3), "mismatch vs bf16 reference"
    ref_f32 = dqn_reference_f32(x, params)
    assert jnp.allclose(out, ref_f32, atol=5e-2, rtol=5e-2), "mismatch vs f32 reference"

    # Batched (training-style) path: exercises the 2-tile "parallel" grid.
    BB = 256
    xb = jax.random.normal(k_xb, (BB, N_OBS), dtype=jnp.float32)
    outb = jax.block_until_ready(dqn_forward(xb, w_slab, b_slab, N_ACT))
    assert outb.shape == (BB, N_ACT)
    refb = dqn_reference_bf16(xb, params)
    assert jnp.allclose(outb, refb, atol=2e-3, rtol=2e-3), "mismatch vs bf16 reference (batched)"

    print("KERNEL_OK")
</pallas_src>

<mosaic_0001>
module attributes {stable_mosaic.version = 11 : i64} {
  func.func @dqn_kernel(%arg0: i32, %arg1: memref<2x4xf32, #tpu.memory_space<vmem>>, %arg2: memref<3x128x128xbf16, #tpu.memory_space<vmem>>, %arg3: memref<3x1x128xf32, #tpu.memory_space<vmem>>, %arg4: memref<2x2xf32, #tpu.memory_space<vmem>>, %arg5: memref<8x128xf32, #tpu.memory_space<vmem>>) attributes {dimension_semantics = [#tpu.dimension_semantics<parallel>], iteration_bounds = array<i64: 1>, scalar_prefetch = 0 : i64, scratch_operands = 1 : i64, tpu.core_type = #tpu.core_type<tc>, window_params = [{transform_indices = @transform_0, window_bounds = array<i64: 2, 4>}, {pipeline_mode = #tpu.pipeline_mode<synchronous>, transform_indices = @transform_1, window_bounds = array<i64: 3, 128, 128>}, {pipeline_mode = #tpu.pipeline_mode<synchronous>, transform_indices = @transform_2, window_bounds = array<i64: 3, 1, 128>}, {transform_indices = @transform_3, window_bounds = array<i64: 2, 2>}]} {
    %cst = arith.constant 0.000000e+00 : f32
    %0 = vector.broadcast %cst : f32 to vector<8x128xf32>
    %c0 = arith.constant 0 : index
    %c0_0 = arith.constant 0 : index
    %1 = vector.load %arg5[%c0, %c0_0] : memref<8x128xf32, #tpu.memory_space<vmem>>, vector<8x128xf32>
    tpu.vector_store %arg5[%c0, %c0_0], %0 {strides = array<i32>} : memref<8x128xf32, #tpu.memory_space<vmem>>, vector<8x128xf32>,
    %c0_1 = arith.constant 0 : index
    %c0_2 = arith.constant 0 : index
    %2 = vector.load %arg1[%c0_1, %c0_2] : memref<2x4xf32, #tpu.memory_space<vmem>>, vector<2x4xf32>
    %c0_3 = arith.constant 0 : index
    %c0_4 = arith.constant 0 : index
    %3 = vector.load %arg5[%c0_3, %c0_4] : memref<8x128xf32, #tpu.memory_space<vmem>>, vector<2x4xf32>
    tpu.vector_store %arg5[%c0_3, %c0_4], %2 {strides = array<i32>} : memref<8x128xf32, #tpu.memory_space<vmem>>, vector<2x4xf32>,
    %c0_5 = arith.constant 0 : index
    %c0_6 = arith.constant 0 : index
    %4 = vector.load %arg5[%c0_5, %c0_6] : memref<8x128xf32, #tpu.memory_space<vmem>>, vector<8x128xf32>
    %5 = arith.truncf %4 : vector<8x128xf32> to vector<8x128xbf16>
    %c0_7 = arith.constant 0 : index
    %c0_8 = arith.constant 0 : index
    %c0_9 = arith.constant 0 : index
    %6 = vector.load %arg2[%c0_7, %c0_8, %c0_9] : memref<3x128x128xbf16, #tpu.memory_space<vmem>>, vector<1x128x128xbf16>
    %7 = vector.shape_cast %6 : vector<1x128x128xbf16> to vector<128x128xbf16>
    %cst_10 = arith.constant dense<0.000000e+00> : vector<8x128xf32>
    %8 = tpu.matmul %5, %7, %cst_10 {dimension_numbers = #tpu.dot_dimension_numbers<[1], [0], [0], [1], [0, 0, 1, 1], [], []>} : vector<8x128xbf16>, vector<128x128xbf16>, vector<8x128xf32> -> vector<8x128xf32>
    %c0_11 = arith.constant 0 : index
    %c0_12 = arith.constant 0 : index
    %c0_13 = arith.constant 0 : index
    %9 = vector.load %arg3[%c0_11, %c0_12, %c0_13] : memref<3x1x128xf32, #tpu.memory_space<vmem>>, vector<1x1x128xf32>
    %10 = vector.shape_cast %9 : vector<1x1x128xf32> to vector<1x128xf32>
    %11 = vector.broadcast %10 : vector<1x128xf32> to vector<8x128xf32>
    %12 = arith.addf %8, %11 : vector<8x128xf32>
    %cst_14 = arith.constant 0.000000e+00 : f32
    %13 = vector.broadcast %cst_14 : f32 to vector<8x128xf32>
    %14 = arith.maximumf %12, %13 : vector<8x128xf32>
    %15 = arith.truncf %14 : vector<8x128xf32> to vector<8x128xbf16>
    %c1 = arith.constant 1 : index
    %c0_15 = arith.constant 0 : index
    %c0_16 = arith.constant 0 : index
    %16 = vector.load %arg2[%c1, %c0_15, %c0_16] : memref<3x128x128xbf16, #tpu.memory_space<vmem>>, vector<1x128x128xbf16>
    %17 = vector.shape_cast %16 : vector<1x128x128xbf16> to vector<128x128xbf16>
    %cst_17 = arith.constant dense<0.000000e+00> : vector<8x128xf32>
    %18 = tpu.matmul %15, %17, %cst_17 {dimension_numbers = #tpu.dot_dimension_numbers<[1], [0], [0], [1], [0, 0, 1, 1], [], []>} : vector<8x128xbf16>, vector<128x128xbf16>, vector<8x128xf32> -> vector<8x128xf32>
    %c1_18 = arith.constant 1 : index
    %c0_19 = arith.constant 0 : index
    %c0_20 = arith.constant 0 : index
    %19 = vector.load %arg3[%c1_18, %c0_19, %c0_20] : memref<3x1x128xf32, #tpu.memory_space<vmem>>, vector<1x1x128xf32>
    %20 = vector.shape_cast %19 : vector<1x1x128xf32> to vector<1x128xf32>
    %21 = vector.broadcast %20 : vector<1x128xf32> to vector<8x128xf32>
    %22 = arith.addf %18, %21 : vector<8x128xf32>
    %cst_21 = arith.constant 0.000000e+00 : f32
    %23 = vector.broadcast %cst_21 : f32 to vector<8x128xf32>
    %24 = arith.maximumf %22, %23 : vector<8x128xf32>
    %25 = arith.truncf %24 : vector<8x128xf32> to vector<8x128xbf16>
    %c2 = arith.constant 2 : index
    %c0_22 = arith.constant 0 : index
    %c0_23 = arith.constant 0 : index
    %26 = vector.load %arg2[%c2, %c0_22, %c0_23] : memref<3x128x128xbf16, #tpu.memory_space<vmem>>, vector<1x128x128xbf16>
    %27 = vector.shape_cast %26 : vector<1x128x128xbf16> to vector<128x128xbf16>
    %cst_24 = arith.constant dense<0.000000e+00> : vector<8x128xf32>
    %28 = tpu.matmul %25, %27, %cst_24 {dimension_numbers = #tpu.dot_dimension_numbers<[1], [0], [0], [1], [0, 0, 1, 1], [], []>} : vector<8x128xbf16>, vector<128x128xbf16>, vector<8x128xf32> -> vector<8x128xf32>
    %c2_25 = arith.constant 2 : index
    %c0_26 = arith.constant 0 : index
    %c0_27 = arith.constant 0 : index
    %29 = vector.load %arg3[%c2_25, %c0_26, %c0_27] : memref<3x1x128xf32, #tpu.memory_space<vmem>>, vector<1x1x128xf32>
    %30 = vector.shape_cast %29 : vector<1x1x128xf32> to vector<1x128xf32>
    %31 = vector.broadcast %30 : vector<1x128xf32> to vector<8x128xf32>
    %32 = arith.addf %28, %31 : vector<8x128xf32>
    %33 = vector.extract_strided_slice %32 {offsets = [0, 0], sizes = [2, 2], strides = [1, 1]} : vector<8x128xf32> to vector<2x2xf32>
    %c0_28 = arith.constant 0 : index
    %c0_29 = arith.constant 0 : index
    %34 = vector.load %arg4[%c0_28, %c0_29] : memref<2x2xf32, #tpu.memory_space<vmem>>, vector<2x2xf32>
    tpu.vector_store %arg4[%c0_28, %c0_29], %33 {strides = array<i32>} : memref<2x2xf32, #tpu.memory_space<vmem>>, vector<2x2xf32>,
    return
  }
  func.func @transform_0(%arg0: i32) -> (i32, i32) {
    %c0_i32 = arith.constant 0 : i32
    %c0_i32_0 = arith.constant 0 : i32
    return %arg0, %c0_i32 : i32, i32
  }
  func.func @transform_1(%arg0: i32) -> (i32, i32, i32) {
    %c0_i32 = arith.constant 0 : i32
    %c0_i32_0 = arith.constant 0 : i32
    %c0_i32_1 = arith.constant 0 : i32
    %c0_i32_2 = arith.constant 0 : i32
    return %c0_i32, %c0_i32_0, %c0_i32_1 : i32, i32, i32
  }
  func.func @transform_2(%arg0: i32) -> (i32, i32, i32) {
    %c0_i32 = arith.constant 0 : i32
    %c0_i32_0 = arith.constant 0 : i32
    %c0_i32_1 = arith.constant 0 : i32
    %c0_i32_2 = arith.constant 0 : i32
    return %c0_i32, %c0_i32_0, %c0_i32_1 : i32, i32, i32
  }
  func.func @transform_3(%arg0: i32) -> (i32, i32) {
    %c0_i32 = arith.constant 0 : i32
    %c0_i32_0 = arith.constant 0 : i32
    return %arg0, %c0_i32 : i32, i32
  }
}

</mosaic_0001>

<bundles_post_ra>
// kernel: dqn_forward.1
= control target key start
LH: loop header
LB: loop body
LE: loop exit
PB: predicated region body
PF: predicated region fallthrough
CT: control target
= control target key end

     0   :  { %8 = vsyncpa [#allocation4], 0  ;;  %s736_s0 = inlined_call_operand.hbm [shape: f32[2,4], index: 0, kind: input, shape index: {}]   ;;  %s737_s1 = inlined_call_operand.hbm [shape: bf16[3,128,128], index: 1, kind: input, shape index: {}]   ;;  %s738_s2 = inlined_call_operand.vmem [shape: f32[3,1,128], index: 2, kind: input, shape index: {}]   ;;  %s739_s3 = inlined_call_operand.hbm [shape: f32[2,2], index: 3, kind: output, shape index: {}]  }
   0x1   :  { %9 = vsyncpa [#allocation7], 0 }
   0x2   :  { %10 = vsyncpa [#allocation5], 0  ;;  %s626_s12 = smov [#allocation3]   ;;  %s627_s14 = smov [#allocation6]  }
   0x3   :  { %s17_s13 = sshll.u32 %s626_s12, 4  ;;  %s26_s15 = sshll.u32 %s627_s14, 4  ;;  %s18_s13 = int_to_ptr.vmem [resolvable:$true] %s17_s13  ;;  %s653_s15 = int_to_ptr.vmem [resolvable:$true] %s26_s15 }
   0x4   :  { %s554_s18 = scalar_lea.hbm %s736_s0, 32 }
   0x5   :  { %p555_p0 = scmp.ne.s32.totalorder %s736_s0, %s554_s18  ;;  %p558_p1 = scmp.lt.u32.totalorder %s554_s18, %s736_s0 }
   0x7   :  { %p560_p2 = pnand %p558_p1, %p555_p0 }
   0x9   :  { %563 = shalt.err (!%p560_p2)
}
   0xa   :  { %s564_s23 = scalar_lea.vmem %s18_s13, 32  ;;  %p569_p4 = scmp.lt.s32.totalorder %s18_s13, %s18_s13 }
   0xb   :  { %p565_p3 = scmp.ne.s32.totalorder %s18_s13, %s564_s23  ;;  %p570_p5 = scmp.lt.s32.totalorder %s564_s23, %s564_s23 }
   0xd   :  { %p571_p6 = por %p570_p5, %p569_p4 }
   0xf   :  { %p572_p7 = pnand %p571_p6, %p565_p3 }
  0x11   :  { %575 = shalt.err (!%p572_p7)
}
  0x12   :  { %20 = dma.hbm_to_vmem [thread:$0]  %s736_s0, 32, %s18_s13, [#allocation4]  }
  0x13   :  { %s576_s28 = scalar_lea.hbm %s737_s1, 3072 }
  0x14   :  { %p577_p8 = scmp.ne.s32.totalorder %s737_s1, %s576_s28  ;;  %p580_p9 = scmp.lt.u32.totalorder %s576_s28, %s737_s1 }
  0x16   :  { %p582_p10 = pnand %p580_p9, %p577_p8 }
  0x18   :  { %585 = shalt.err (!%p582_p10)
}
  0x19   :  { %s586_s6 = scalar_lea.vmem %s653_s15, 3072  ;;  %p591_p12 = scmp.lt.s32.totalorder %s653_s15, %s653_s15 }
  0x1a   :  { %p587_p11 = scmp.ne.s32.totalorder %s653_s15, %s586_s6  ;;  %p592_p13 = scmp.lt.s32.totalorder %s586_s6, %s586_s6 }
  0x1c   :  { %p593_p0 = por %p592_p13, %p591_p12 }
  0x1e   :  { %p594_p1 = pnand %p593_p0, %p587_p11 }
  0x20   :  { %597 = shalt.err (!%p594_p1)
}
  0x21   :  { %s628_s0 = smov 64   ;;  %s629_s7 = smov 4  }
  0x22   :  { %32 = dma.hbm_to_vmem [thread:$0]  %s737_s1, 3072, %s653_s15, [#allocation7], %s628_s0, %s628_s0, %s629_s7  }
  0x23   :  { %620 = dma.done.wait [#allocation4], 32  }
  0x24   :  { %621 = vsyncadd [#allocation4], 4294967264 }
  0x25   :  { %622 = dma.done.wait [#allocation7], 3072  }
  0x26   :  { %623 = vsyncadd [#allocation7], 4294964224  ;;  %v630_v0 = vmov 0.0   ;;  %vm631_vm0 = vmmov 0   ;;  %v530_v1 = vld [vmem:[#allocation6] sm:$0xff]   ;;  %v531_v2 = vld [vmem:[#allocation6 + $0x8] sm:$0xff]  }
  0x27   :  { %463 = vmatprep.subr.bf16.mxu0 %v630_v0  ;;  %42 = vst [vmem:[#allocation2] sm:$0xff] %v630_v0  ;;  %479 = vmatprep.mubr.msk.bf16.mxu0 %vm631_vm0, %v630_v0  ;;  %v532_v3 = vld [vmem:[#allocation6 + $0x10] sm:$0xff]   ;;  %vm44_vm1 = vcmask 25600   ;;  %v43_v4 = vld [vmem:[#allocation3] sm:$0x3]  ;;  %v538_v5 = vld [vmem:[#allocation6 + $0x40] sm:$0xff]  }
  0x28   :  { %483 = vmatprep.subr.bf16.mxu1 %v630_v0  ;;  %499 = vmatprep.mubr.msk.bf16.mxu1 %vm631_vm0, %v630_v0  ;;  %45 = vst.msk [vmem:[#allocation2] sm:$0x3] %vm44_vm1, %v43_v4  ;;  %v533_v6 = vld [vmem:[#allocation6 + $0x18] sm:$0xff]   ;;  %v539_v7 = vld [vmem:[#allocation6 + $0x48] sm:$0xff]   ;;  %v534_v8 = vld [vmem:[#allocation6 + $0x20] sm:$0xff]   ;;  %s632_s15 = smov [#allocation8]  }
  0x29   :  { %464 = vmatpush3.bf16.msra.mxu0 %v530_v1  ;;  %484 = vmatpush3.bf16.msra.mxu1 %v538_v5  ;;  %v540_v9 = vld [vmem:[#allocation6 + $0x50] sm:$0xff]   ;;  %v535_v10 = vld [vmem:[#allocation6 + $0x28] sm:$0xff]   ;;  %v541_v11 = vld [vmem:[#allocation6 + $0x58] sm:$0xff]   ;;  %s397_s16 = sshll.u32 %s632_s15, 4  ;;  %vm389_vm2 = vcmask 9216   ;;  %s398_s16 = int_to_ptr.vmem [resolvable:$true] %s397_s16 }
  0x2a   :  { %465 = vmatprep.subr.bf16.mxu0 %v630_v0  ;;  %485 = vmatprep.subr.bf16.mxu1 %v630_v0  ;;  %v536_v12 = vld [vmem:[#allocation6 + $0x30] sm:$0xff]   ;;  %v542_v13 = vld [vmem:[#allocation6 + $0x60] sm:$0xff]   ;;  %v537_v14 = vld [vmem:[#allocation6 + $0x38] sm:$0xff]   ;;  %s598_s17 = scalar_lea.vmem %s398_s16, 32  ;;  %p603_p3 = scmp.lt.s32.totalorder %s398_s16, %s398_s16 }
  0x2b   :  { %v543_v16 = vld [vmem:[#allocation6 + $0x68] sm:$0xff]   ;;  %v544_v18 = vld [vmem:[#allocation6 + $0x70] sm:$0xff]   ;;  %v545_v19 = vld [vmem:[#allocation6 + $0x78] sm:$0xff]   ;;  %p599_p2 = scmp.ne.s32.totalorder %s398_s16, %s598_s17  ;;  %p604_p4 = scmp.lt.s32.totalorder %s598_s17, %s598_s17 }
  0x2c   :  { %v546_v20 = vld [vmem:[#allocation6 + $0x80] sm:$0xff]   ;;  %v547_v21 = vld [vmem:[#allocation6 + $0x88] sm:$0xff]   ;;  %v548_v22 = vld [vmem:[#allocation6 + $0x90] sm:$0xff]  }
  0x2d   :  { %466 = vmatpush3.bf16.msra.mxu0 %v531_v2  ;;  %486 = vmatpush3.bf16.msra.mxu1 %v539_v7  ;;  %v549_v23 = vld [vmem:[#allocation6 + $0x98] sm:$0xff]   ;;  %v550_v24 = vld [vmem:[#allocation6 + $0xa0] sm:$0xff]   ;;  %v551_v25 = vld [vmem:[#allocation6 + $0xa8] sm:$0xff]   ;;  %p605_p5 = por %p604_p4, %p603_p3 }
  0x2e   :  { %467 = vmatprep.subr.bf16.mxu0 %v630_v0  ;;  %487 = vmatprep.subr.bf16.mxu1 %v630_v0  ;;  %v407_v26 = vld [vmem:[%s738_s2] ss:$0 sm:$0xff]  ;;  %v552_v34 = vld [vmem:[#allocation6 + $0xb0] sm:$0xff]   ;;  %v553_v35 = vld [vmem:[#allocation6 + $0xb8] sm:$0xff]  }
  0x2f   :  { %v46_v15 = vld [vmem:[#allocation2] sm:$0xff]  ;;  %v417_v36 = vld [vmem:[%s738_s2 + $0x1] ss:$0 sm:$0xff]  ;;  %v427_v44 = vld [vmem:[%s738_s2 + $0x2] ss:$0 sm:$0xff]  ;;  %p606_p6 = pnand %p605_p5, %p599_p2 }
  0x30   :  { %v47_v17 = vpack.c.bf16 %v46_v15, %v46_v15 }
  0x31   :  { %468 = vmatpush3.bf16.msra.mxu0 %v532_v3  ;;  %488 = vmatpush3.bf16.msra.mxu1 %v540_v9 }
  0x32   :  { %469 = vmatprep.subr.bf16.mxu0 %v630_v0  ;;  %489 = vmatprep.subr.bf16.mxu1 %v630_v0 }
  0x35   :  { %470 = vmatpush3.bf16.msra.mxu0 %v533_v6  ;;  %490 = vmatpush3.bf16.msra.mxu1 %v541_v11 }
  0x36   :  { %471 = vmatprep.subr.bf16.mxu0 %v630_v0  ;;  %491 = vmatprep.subr.bf16.mxu1 %v630_v0 }
  0x39   :  { %472 = vmatpush3.bf16.msra.mxu0 %v534_v8  ;;  %492 = vmatpush3.bf16.msra.mxu1 %v542_v13 }
  0x3a   :  { %473 = vmatprep.subr.bf16.mxu0 %v630_v0  ;;  %493 = vmatprep.subr.bf16.mxu1 %v630_v0 }
  0x3d   :  { %474 = vmatpush3.bf16.msra.mxu0 %v535_v10  ;;  %494 = vmatpush3.bf16.msra.mxu1 %v543_v16 }
  0x3e   :  { %475 = vmatprep.subr.bf16.mxu0 %v630_v0  ;;  %495 = vmatprep.subr.bf16.mxu1 %v630_v0 }
  0x41   :  { %476 = vmatpush3.bf16.msra.mxu0 %v536_v12  ;;  %496 = vmatpush3.bf16.msra.mxu1 %v544_v18 }
  0x42   :  { %477 = vmatprep.subr.bf16.mxu0 %v630_v0  ;;  %497 = vmatprep.subr.bf16.mxu1 %v630_v0 }
  0x45   :  { %478 = vmatpush3.bf16.msra.mxu0 %v537_v14  ;;  %498 = vmatpush3.bf16.msra.mxu1 %v545_v19 }
  0x46   :  { %503 = vmatprep.subr.bf16.mxu0 %v630_v0 }
  0x48   :  { %480 = vmatmul.mubr.bf16.vlgmr.msra.gmra.mrb[0].mxu0 %v47_v17 }
  0x49   :  { %519 = vmatprep.mubr.msk.bf16.mxu0 %vm631_vm0, %v630_v0  ;;  %504 = vmatpush3.bf16.msra.mxu0 %v546_v20 }
  0x4a   :  { %505 = vmatprep.subr.bf16.mxu0 %v630_v0 }
  0x4d   :  { %506 = vmatpush3.bf16.msra.mxu0 %v547_v21 }
  0x4e   :  { %507 = vmatprep.subr.bf16.mxu0 %v630_v0 }
  0x51   :  { %508 = vmatpush3.bf16.msra.mxu0 %v548_v22 }
  0x52   :  { %509 = vmatprep.subr.bf16.mxu0 %v630_v0 }
  0x55   :  { %510 = vmatpush3.bf16.msra.mxu0 %v549_v23 }
  0x56   :  { %511 = vmatprep.subr.bf16.mxu0 %v630_v0 }
  0x59   :  { %512 = vmatpush3.bf16.msra.mxu0 %v550_v24 }
  0x5a   :  { %513 = vmatprep.subr.bf16.mxu0 %v630_v0 }
  0x5d   :  { %514 = vmatpush3.bf16.msra.mxu0 %v551_v25 }
  0x5e   :  { %515 = vmatprep.subr.bf16.mxu0 %v630_v0 }
  0x61   :  { %516 = vmatpush3.bf16.msra.mxu0 %v552_v34 }
  0x62   :  { %517 = vmatprep.subr.bf16.mxu0 %v630_v0 }
  0x65   :  { %518 = vmatpush3.bf16.msra.mxu0 %v553_v35 }
 0x11b   :  { %v153_v27 = vpop.f32.mrb[0].mxu0 }
 0x11c   :  { %v154_v28 = vadd.f32 %v407_v26, %v153_v27  ;;  %v481_v29 = vpop.f32.mrb[1].mxu0 }
 0x11d   :  { %v156_v30 = vpop.f32.mrb[2].mxu0 }
 0x11e   :  { %v159_v31 = vmax.f32 %v154_v28, 0.0  ;;  %v482_v32 = vpop.f32.mrb[3].mxu0 }
 0x120   :  { %v160_v33 = vpack.c.bf16 %v159_v31, %v159_v31 }
 0x122   :  { %500 = vmatmul.mubr.bf16.vlgmr.msra.gmra.mrb[0].mxu1 %v160_v33 }
 0x1f5   :  { %v268_v37 = vpop.f32.mrb[0].mxu1 }
 0x1f6   :  { %v269_v38 = vadd.f32 %v417_v36, %v268_v37  ;;  %v501_v39 = vpop.f32.mrb[1].mxu1 }
 0x1f7   :  { %v271_v40 = vpop.f32.mrb[2].mxu1 }
 0x1f8   :  { %v274_v41 = vmax.f32 %v269_v38, 0.0  ;;  %v502_v42 = vpop.f32.mrb[3].mxu1 }
 0x1fa   :  { %v275_v43 = vpack.c.bf16 %v274_v41, %v274_v41 }
 0x1fc   :  { %520 = vmatmul.mubr.bf16.vlgmr.msra.gmra.mrb[4].mxu0 %v275_v43 }
 0x2cf   :  { %v383_v45 = vpop.f32.mrb[4].mxu0 }
 0x2d0   :  { %v384_v46 = vadd.f32 %v427_v44, %v383_v45  ;;  %v521_v47 = vpop.f32.mrb[5].mxu0 }
 0x2d1   :  { %v386_v48 = vpop.f32.mrb[6].mxu0 }
 0x2d2   :  { %v522_v49 = vpop.f32.mrb[7].mxu0  ;;  %390 = vst.msk [vmem:[#allocation8] sm:$0x3] %vm389_vm2, %v384_v46 }
 0x2d3   :  { %609 = shalt.err (!%p606_p6)
}
 0x2d4   :  { %s610_s2 = scalar_lea.hbm %s739_s3, 32 }
 0x2d5   :  { %p611_p7 = scmp.ne.s32.totalorder %s739_s3, %s610_s2  ;;  %p614_p8 = scmp.lt.u32.totalorder %s610_s2, %s739_s3 }
 0x2d7   :  { %p616_p9 = pnand %p614_p8, %p611_p7 }
 0x2d9   :  { %619 = shalt.err (!%p616_p9)
}
 0x2da   :  { %400 = dma.vmem_to_hbm [thread:$0]  %s398_s16, 32, %s739_s3, [#allocation5]  }
 0x2db   :  { %624 = dma.done.wait [#allocation5], 32  }
 0x2dc   :  { %625 = vsyncadd [#allocation5], 4294967264 }
 0x2dd   :  { %404 = vsyncpa [#allocation4], 1 }
 0x2de   :  { %405 = vsyncpa [#allocation7], 1 }
 0x2df   :  { %406 = vsyncpa [#allocation5], 1 }

</bundles_post_ra>
